<compile_context>
chip_gen: v5e
topology: v5e:2x2
jax: 0.10.0
libtpu: 0.0.40
codegen_flags: <defaults>
</compile_context>

<pallas_src>
import jax
import jax.numpy as jnp
from jax.experimental import pallas as pl
from jax.experimental.pallas import tpu as pltpu


def _round_up(n, m):
    return ((n + m - 1) // m) * m


def dnet_kernel(x_ref, w1_ref, b1_ref, w2_ref, b2_ref, w3_ref, b3_ref, o_ref):
    # x arrives in f32 straight from HBM; cast to bf16 on the VPU right before
    # the MXU (no separate wrapper-side cast pass over the whole array).
    x = x_ref[...].astype(jnp.bfloat16)                                # (TM, P*C)

    # Linear(C, C) + ReLU   (packed: block-diagonal weights)
    h1 = jnp.dot(x, w1_ref[...], preferred_element_type=jnp.float32) + b1_ref[...]
    h1 = jnp.maximum(h1, 0.0).astype(jnp.bfloat16)

    # Linear(C, C//2) + ReLU
    h2 = jnp.dot(h1, w2_ref[...], preferred_element_type=jnp.float32) + b2_ref[...]
    h2 = jnp.maximum(h2, 0.0).astype(jnp.bfloat16)

    # Linear(C//2, 1)       (packed: (P*C//2, P))
    logits = jnp.dot(h2, w3_ref[...], preferred_element_type=jnp.float32) + b3_ref[...]

    # sigmoid on the EUP: exp + approximate reciprocal (f32 throughout).
    probs = pl.reciprocal(1.0 + jnp.exp(-logits), approx=True)         # (TM, P)

    # Transpose (TM, P) -> (P, TM) on the XLU so the store is lane-dense
    # (unmasked full-width vst instead of P-of-128-lane masked stores).
    o_ref[...] = probs.T


def pack_params(params):
    """Pack parameters for the lane-packed kernel.  Call ONCE at init time.

    Returns (packed_params, P, C): block-diagonal bf16 weights stored as
    (in_features, out_features) and P-tiled f32 biases (1, out)."""
    w1, b1, w2, b2, w3, b3 = params
    C = w1.shape[0]
    # Lane-packing factor: pack P samples per 128-lane row when C divides 128.
    # TODO(synk): for C not dividing 128 (P=1) lane utilization drops to C/128;
    # pad C up to a divisor of 128 in that case.
    P = 128 // C if (C <= 128 and 128 % C == 0) else 1

    def blk(w):
        return jnp.kron(jnp.eye(P, dtype=jnp.float32), w).astype(jnp.bfloat16)

    def tile_b(b):
        return jnp.tile(b.reshape(1, -1), (1, P)).astype(jnp.float32)

    packed = (blk(w1), tile_b(b1), blk(w2), tile_b(b2), blk(w3), tile_b(b3))
    return packed, P, C


def d_net_forward(x, packed_params, P, C, *, tm_max=8192):
    """x: any shape (..., C). Returns sigmoid(MLP(x)).reshape(-1), like the PyTorch module."""
    w1b, b1b, w2b, b2b, w3b, b3b = packed_params
    x_2d = x.reshape(-1, C)
    M = x_2d.shape[0]

    rows = pl.cdiv(M, P)                        # packed rows holding real data
    if rows * P != M:                           # at most P-1 rows of padding
        x_2d = jnp.pad(x_2d, ((0, rows * P - M), (0, 0)))
    # Free row-major reshape (no copy): P samples side by side per 128-lane row.
    x_packed = x_2d.reshape(rows, P * C)        # stays f32 in HBM

    # Row tile: multiple of 128 (keeps the transposed out block lane-aligned),
    # capped at tm_max, and <= ~rows/2 so the grid has >=2 steps whenever there
    # is enough work (v7x megacore sharding of the "parallel" axis).
    tm = min(tm_max, max(128, _round_up(pl.cdiv(rows, 2), 128)))
    if rows < tm:
        # Tiny input: cheap pad so the single block exactly covers it.  Larger
        # inputs rely on Pallas partial-last-block handling (no full-array pad
        # copy); the garbage rows only produce discarded sigmoid values.
        x_packed = jnp.pad(x_packed, ((0, tm - rows), (0, 0)))
        rows_in = tm
    else:
        rows_in = rows
    grid_m = pl.cdiv(rows_in, tm)
    rows_out = grid_m * tm                      # output array fully covered by blocks

    pc = P * C                 # packed input width   (128 for C=32)
    ph = w2b.shape[1]          # packed hidden width  (64  for C=32)
    po = w3b.shape[1]          # packed output width  (P -> 4 for C=32)

    row_spec = lambda i: (i, 0)
    col_spec = lambda i: (0, i)   # transposed (lane-dense) output tiles
    fix_spec = lambda i: (0, 0)   # weights/biases stay VMEM-resident across the grid

    out = pl.pallas_call(
        dnet_kernel,
        out_shape=jax.ShapeDtypeStruct((po, rows_out), jnp.float32),
        grid=(grid_m,),
        in_specs=[
            pl.BlockSpec((tm, pc), row_spec),       # x tile (f32, pipelined)
            pl.BlockSpec((pc, pc), fix_spec),       # W1 (block-diag, bf16)
            pl.BlockSpec((1, pc), fix_spec),        # b1
            pl.BlockSpec((pc, ph), fix_spec),       # W2 (block-diag, bf16)
            pl.BlockSpec((1, ph), fix_spec),        # b2
            pl.BlockSpec((ph, po), fix_spec),       # W3 (block-diag, bf16)
            pl.BlockSpec((1, po), fix_spec),        # b3
        ],
        out_specs=pl.BlockSpec((po, tm), col_spec),
        compiler_params=pltpu.CompilerParams(
            dimension_semantics=("parallel",),      # row tiles independent -> megacore
            vmem_limit_bytes=48 * 1024 * 1024,      # headroom for 4 MiB f32 x tiles (v5e default is 16 MiB)
        ),
    )(x_packed, w1b, b1b, w2b, b2b, w3b, b3b)

    # (po, rows_out): sample r*P + p lives at out[p, r]; restore sample order.
    return out.T.reshape(-1)[:M]


def init_params(key, channels):
    """Deterministic parameter init matching nn.Linear shapes.

    Weights stored transposed: (in_features, out_features); biases as (1, out)."""
    c = channels
    k1, k2, k3, k4, k5, k6 = jax.random.split(key, 6)

    def lin(kw, kb, fan_in, fan_out):
        bound = 1.0 / jnp.sqrt(fan_in)
        w = jax.random.uniform(kw, (fan_in, fan_out), jnp.float32, -bound, bound)
        b = jax.random.uniform(kb, (1, fan_out), jnp.float32, -bound, bound)
        return w, b

    w1, b1 = lin(k1, k2, c, c)
    w2, b2 = lin(k3, k4, c, c // 2)
    w3, b3 = lin(k5, k6, c // 2, 1)
    return (w1, b1, w2, b2, w3, b3)


def d_net_reference_f32(x, params):
    """Plain-JAX f32 reference mirroring the PyTorch forward."""
    w1, b1, w2, b2, w3, b3 = params
    h = x.reshape(-1, w1.shape[0])
    h = jnp.maximum(h @ w1 + b1, 0.0)
    h = jnp.maximum(h @ w2 + b2, 0.0)
    h = h @ w3 + b3
    return jax.nn.sigmoid(h.reshape(-1))


def d_net_reference_bf16(x, params):
    """Reference mirroring the kernel numerics: bf16 inputs/weights, f32 accumulate."""
    w1, b1, w2, b2, w3, b3 = params
    bf = jnp.bfloat16
    h = x.reshape(-1, w1.shape[0]).astype(bf)
    h = jnp.maximum(jnp.dot(h, w1.astype(bf), preferred_element_type=jnp.float32) + b1, 0.0).astype(bf)
    h = jnp.maximum(jnp.dot(h, w2.astype(bf), preferred_element_type=jnp.float32) + b2, 0.0).astype(bf)
    h = jnp.dot(h, w3.astype(bf), preferred_element_type=jnp.float32) + b3
    return jax.nn.sigmoid(h.reshape(-1))


if __name__ == "__main__":
    key = jax.random.PRNGKey(0)
    k_x, k_x2, k_x3, k_p = jax.random.split(key, 4)

    num_of_FM = 4          # unused in forward (matches the PyTorch module)
    channels = 32
    batch, seq = 2, 8

    # Input with last dim = channels (the Linear feature axis).
    x = jax.random.normal(k_x, (batch, seq, channels), dtype=jnp.float32)
    params = init_params(k_p, channels)
    packed, P, C = pack_params(params)     # one-time packing: NOT in the hot path

    out = jax.block_until_ready(d_net_forward(x, packed, P, C))
    assert out.shape == (batch * seq,)
    assert jnp.allclose(out, d_net_reference_bf16(x, params), atol=2e-3), "bf16-mirrored mismatch"
    assert jnp.allclose(out, d_net_reference_f32(x, params), atol=3e-2), "f32 mismatch"

    # Larger case: exercises the multi-tile grid (grid=2), lane-dense stores and
    # the partial-last-block path (rows=1250, tm=640 -> last block 610 valid rows).
    x_big = jax.random.normal(k_x2, (5000, channels), dtype=jnp.float32)
    out_big = jax.block_until_ready(d_net_forward(x_big, packed, P, C))
    assert out_big.shape == (5000,)
    assert jnp.allclose(out_big, d_net_reference_bf16(x_big, params), atol=2e-3), "big case mismatch"

    # Non-multiple-of-P sample count: exercises the small remainder pad plus a
    # partial last block (rows=251, tm=128, grid=2).
    x_odd = jax.random.normal(k_x3, (1003, channels), dtype=jnp.float32)
    out_odd = jax.block_until_ready(d_net_forward(x_odd, packed, P, C))
    assert out_odd.shape == (1003,)
    assert jnp.allclose(out_odd, d_net_reference_bf16(x_odd, params), atol=2e-3), "odd case mismatch"

    print("KERNEL_OK")
</pallas_src>

<mosaic_0001>
module attributes {stable_mosaic.version = 11 : i64} {
  func.func @dnet_kernel(%arg0: i32, %arg1: memref<128x128xf32, #tpu.memory_space<vmem>>, %arg2: memref<128x128xbf16, #tpu.memory_space<vmem>>, %arg3: memref<1x128xf32, #tpu.memory_space<vmem>>, %arg4: memref<128x64xbf16, #tpu.memory_space<vmem>>, %arg5: memref<1x64xf32, #tpu.memory_space<vmem>>, %arg6: memref<64x4xbf16, #tpu.memory_space<vmem>>, %arg7: memref<1x4xf32, #tpu.memory_space<vmem>>, %arg8: memref<4x128xf32, #tpu.memory_space<vmem>>) attributes {dimension_semantics = [#tpu.dimension_semantics<parallel>], iteration_bounds = array<i64: 1>, scalar_prefetch = 0 : i64, scratch_operands = 0 : i64, tpu.core_type = #tpu.core_type<tc>, window_params = [{transform_indices = @transform_0, window_bounds = array<i64: 128, 128>}, {pipeline_mode = #tpu.pipeline_mode<synchronous>, transform_indices = @transform_1, window_bounds = array<i64: 128, 128>}, {pipeline_mode = #tpu.pipeline_mode<synchronous>, transform_indices = @transform_2, window_bounds = array<i64: 1, 128>}, {pipeline_mode = #tpu.pipeline_mode<synchronous>, transform_indices = @transform_3, window_bounds = array<i64: 128, 64>}, {pipeline_mode = #tpu.pipeline_mode<synchronous>, transform_indices = @transform_4, window_bounds = array<i64: 1, 64>}, {pipeline_mode = #tpu.pipeline_mode<synchronous>, transform_indices = @transform_5, window_bounds = array<i64: 64, 4>}, {pipeline_mode = #tpu.pipeline_mode<synchronous>, transform_indices = @transform_6, window_bounds = array<i64: 1, 4>}, {transform_indices = @transform_7, window_bounds = array<i64: 4, 128>}]} {
    %c0 = arith.constant 0 : index
    %c0_0 = arith.constant 0 : index
    %0 = vector.load %arg1[%c0, %c0_0] : memref<128x128xf32, #tpu.memory_space<vmem>>, vector<128x128xf32>
    %1 = arith.truncf %0 : vector<128x128xf32> to vector<128x128xbf16>
    %c0_1 = arith.constant 0 : index
    %c0_2 = arith.constant 0 : index
    %2 = vector.load %arg2[%c0_1, %c0_2] : memref<128x128xbf16, #tpu.memory_space<vmem>>, vector<128x128xbf16>
    %cst = arith.constant dense<0.000000e+00> : vector<128x128xf32>
    %3 = tpu.matmul %1, %2, %cst {dimension_numbers = #tpu.dot_dimension_numbers<[1], [0], [0], [1], [0, 0, 1, 1], [], []>} : vector<128x128xbf16>, vector<128x128xbf16>, vector<128x128xf32> -> vector<128x128xf32>
    %c0_3 = arith.constant 0 : index
    %c0_4 = arith.constant 0 : index
    %4 = vector.load %arg3[%c0_3, %c0_4] : memref<1x128xf32, #tpu.memory_space<vmem>>, vector<1x128xf32>
    %5 = vector.broadcast %4 : vector<1x128xf32> to vector<128x128xf32>
    %6 = arith.addf %3, %5 : vector<128x128xf32>
    %cst_5 = arith.constant 0.000000e+00 : f32
    %7 = vector.broadcast %cst_5 : f32 to vector<128x128xf32>
    %8 = arith.maximumf %6, %7 : vector<128x128xf32>
    %9 = arith.truncf %8 : vector<128x128xf32> to vector<128x128xbf16>
    %c0_6 = arith.constant 0 : index
    %c0_7 = arith.constant 0 : index
    %10 = vector.load %arg4[%c0_6, %c0_7] : memref<128x64xbf16, #tpu.memory_space<vmem>>, vector<128x64xbf16>
    %cst_8 = arith.constant dense<0.000000e+00> : vector<128x64xf32>
    %11 = tpu.matmul %9, %10, %cst_8 {dimension_numbers = #tpu.dot_dimension_numbers<[1], [0], [0], [1], [0, 0, 1, 1], [], []>} : vector<128x128xbf16>, vector<128x64xbf16>, vector<128x64xf32> -> vector<128x64xf32>
    %c0_9 = arith.constant 0 : index
    %c0_10 = arith.constant 0 : index
    %12 = vector.load %arg5[%c0_9, %c0_10] : memref<1x64xf32, #tpu.memory_space<vmem>>, vector<1x64xf32>
    %13 = vector.broadcast %12 : vector<1x64xf32> to vector<128x64xf32>
    %14 = arith.addf %11, %13 : vector<128x64xf32>
    %cst_11 = arith.constant 0.000000e+00 : f32
    %15 = vector.broadcast %cst_11 : f32 to vector<128x64xf32>
    %16 = arith.maximumf %14, %15 : vector<128x64xf32>
    %17 = arith.truncf %16 : vector<128x64xf32> to vector<128x64xbf16>
    %c0_12 = arith.constant 0 : index
    %c0_13 = arith.constant 0 : index
    %18 = vector.load %arg6[%c0_12, %c0_13] : memref<64x4xbf16, #tpu.memory_space<vmem>>, vector<64x4xbf16>
    %cst_14 = arith.constant dense<0.000000e+00> : vector<128x4xf32>
    %19 = tpu.matmul %17, %18, %cst_14 {dimension_numbers = #tpu.dot_dimension_numbers<[1], [0], [0], [1], [0, 0, 1, 1], [], []>} : vector<128x64xbf16>, vector<64x4xbf16>, vector<128x4xf32> -> vector<128x4xf32>
    %c0_15 = arith.constant 0 : index
    %c0_16 = arith.constant 0 : index
    %20 = vector.load %arg7[%c0_15, %c0_16] : memref<1x4xf32, #tpu.memory_space<vmem>>, vector<1x4xf32>
    %21 = vector.broadcast %20 : vector<1x4xf32> to vector<128x4xf32>
    %22 = arith.addf %19, %21 : vector<128x4xf32>
    %cst_17 = arith.constant 0.000000e+00 : f32
    %23 = vector.broadcast %cst_17 : f32 to vector<128x4xf32>
    %24 = arith.subf %23, %22 : vector<128x4xf32>
    %25 = math.exp %24 : vector<128x4xf32>
    %cst_18 = arith.constant 1.000000e+00 : f32
    %26 = vector.broadcast %cst_18 : f32 to vector<128x4xf32>
    %27 = arith.addf %26, %25 : vector<128x4xf32>
    %28 = tpu.reciprocal %27 {approx = true} : vector<128x4xf32> -> vector<128x4xf32>
    %29 = tpu.transpose %28, [1, 0] : vector<128x4xf32> -> vector<4x128xf32>
    %c0_19 = arith.constant 0 : index
    %c0_20 = arith.constant 0 : index
    %30 = vector.load %arg8[%c0_19, %c0_20] : memref<4x128xf32, #tpu.memory_space<vmem>>, vector<4x128xf32>
    tpu.vector_store %arg8[%c0_19, %c0_20], %29 {strides = array<i32>} : memref<4x128xf32, #tpu.memory_space<vmem>>, vector<4x128xf32>,
    return
  }
  func.func @transform_0(%arg0: i32) -> (i32, i32) {
    %c0_i32 = arith.constant 0 : i32
    %c0_i32_0 = arith.constant 0 : i32
    return %arg0, %c0_i32 : i32, i32
  }
  func.func @transform_1(%arg0: i32) -> (i32, i32) {
    %c0_i32 = arith.constant 0 : i32
    %c0_i32_0 = arith.constant 0 : i32
    %c0_i32_1 = arith.constant 0 : i32
    return %c0_i32, %c0_i32_0 : i32, i32
  }
  func.func @transform_2(%arg0: i32) -> (i32, i32) {
    %c0_i32 = arith.constant 0 : i32
    %c0_i32_0 = arith.constant 0 : i32
    %c0_i32_1 = arith.constant 0 : i32
    return %c0_i32, %c0_i32_0 : i32, i32
  }
  func.func @transform_3(%arg0: i32) -> (i32, i32) {
    %c0_i32 = arith.constant 0 : i32
    %c0_i32_0 = arith.constant 0 : i32
    %c0_i32_1 = arith.constant 0 : i32
    return %c0_i32, %c0_i32_0 : i32, i32
  }
  func.func @transform_4(%arg0: i32) -> (i32, i32) {
    %c0_i32 = arith.constant 0 : i32
    %c0_i32_0 = arith.constant 0 : i32
    %c0_i32_1 = arith.constant 0 : i32
    return %c0_i32, %c0_i32_0 : i32, i32
  }
  func.func @transform_5(%arg0: i32) -> (i32, i32) {
    %c0_i32 = arith.constant 0 : i32
    %c0_i32_0 = arith.constant 0 : i32
    %c0_i32_1 = arith.constant 0 : i32
    return %c0_i32, %c0_i32_0 : i32, i32
  }
  func.func @transform_6(%arg0: i32) -> (i32, i32) {
    %c0_i32 = arith.constant 0 : i32
    %c0_i32_0 = arith.constant 0 : i32
    %c0_i32_1 = arith.constant 0 : i32
    return %c0_i32, %c0_i32_0 : i32, i32
  }
  func.func @transform_7(%arg0: i32) -> (i32, i32) {
    %c0_i32 = arith.constant 0 : i32
    %c0_i32_0 = arith.constant 0 : i32
    return %c0_i32, %arg0 : i32, i32
  }
}

</mosaic_0001>

<bundles_post_ra>
// kernel: tpu_custom_call.1
= control target key start
LH: loop header
LB: loop body
LE: loop exit
PB: predicated region body
PF: predicated region fallthrough
CT: control target
= control target key end

     0   :  { %12 = vsyncpa [#allocation3], 0  ;;  %s986_s0 = inlined_call_operand.hbm [shape: f32[128,128], index: 0, kind: input, shape index: {}]   ;;  %s987_s1 = inlined_call_operand.vmem [shape: bf16[128,128], index: 1, kind: input, shape index: {}]   ;;  %s988_s2 = inlined_call_operand.vmem [shape: f32[1,128], index: 2, kind: input, shape index: {}]   ;;  %s989_s3 = inlined_call_operand.vmem [shape: bf16[128,64], index: 3, kind: input, shape index: {}]   ;;  %s990_s4 = inlined_call_operand.vmem [shape: f32[1,64], index: 4, kind: input, shape index: {}]   ;;  %s991_s5 = inlined_call_operand.vmem [shape: bf16[64,4], index: 5, kind: input, shape index: {}]   ;;  %s992_s6 = inlined_call_operand.vmem [shape: f32[1,4], index: 6, kind: input, shape index: {}]   ;;  %s993_s7 = inlined_call_operand.hbm [shape: f32[4,128], index: 7, kind: output, shape index: {}]  }
   0x1   :  { %13 = vsyncpa [#allocation4], 0  ;;  %s18_s26 = sshll.u32 %s986_s0, 4  ;;  %s841_s27 = smov [#allocation2]   ;;  %s19_s26 = int_to_ptr.hbm [resolvable:$true] %s18_s26 }
   0x2   :  { %s20_s28 = sshll.u32 %s841_s27, 4  ;;  %s842_s29 = smov 128   ;;  %s21_s28 = int_to_ptr.vmem [resolvable:$true] %s20_s28 }
   0x3   :  { %s843_s30 = smov 8  }
   0x4   :  { %26 = dma.hbm_to_vmem [thread:$0]  %s19_s26, 2048, %s21_s28, [#allocation3], %s842_s29, %s842_s29, %s843_s30  }
   0x5   :  { %837 = dma.done.wait [#allocation3], 2048  }
   0x6   :  { %838 = vsyncadd [#allocation3], 4294965248  ;;  %v685_v0 = vld [vmem:[%s987_s1 + $0x38] sm:$0xff]  ;;  %v684_v1 = vld [vmem:[%s987_s1 + $0x30] sm:$0xff]  ;;  %vm386_vm0 = vcmask 523264   ;;  %s580_s26 = sshll.u32 %s993_s7, 4  ;;  %s581_s26 = int_to_ptr.hbm [resolvable:$true] %s580_s26 }
   0x7   :  { %136 = vmatpush.bf16.msra.mxu0 %v685_v0  ;;  %698 = vmatpush.bf16.msra.mxu3 %v685_v0  ;;  %v683_v2 = vld [vmem:[%s987_s1 + $0x28] sm:$0xff]  ;;  %v682_v3 = vld [vmem:[%s987_s1 + $0x20] sm:$0xff]  ;;  %v681_v4 = vld [vmem:[%s987_s1 + $0x18] sm:$0xff] }
   0x8   :  { %v680_v5 = vld [vmem:[%s987_s1 + $0x10] sm:$0xff]  ;;  %v679_v6 = vld [vmem:[%s987_s1 + $0x8] sm:$0xff]  ;;  %v678_v7 = vld [vmem:[%s987_s1] sm:$0xff] }
   0x9   :  { %v44_v8 = vld [vmem:[#allocation2] sm:$0xff]  ;;  %v45_v9 = vld [vmem:[#allocation2 + $0x8] sm:$0xff]  ;;  %v46_v11 = vld [vmem:[#allocation2 + $0x10] sm:$0xff] }
   0xa   :  { %v60_v10 = vpack.c.bf16 %v45_v9, %v44_v8  ;;  %v47_v12 = vld [vmem:[#allocation2 + $0x18] sm:$0xff]  ;;  %v56_v14 = vld [vmem:[#allocation2 + $0x60] sm:$0xff]  ;;  %v57_v15 = vld [vmem:[#allocation2 + $0x68] sm:$0xff] }
   0xb   :  { %137 = vmatpush.bf16.msra.mxu0 %v684_v1  ;;  %699 = vmatpush.bf16.msra.mxu3 %v684_v1  ;;  %v61_v13 = vpack.c.bf16 %v47_v12, %v46_v11  ;;  %v66_v16 = vpack.c.bf16 %v57_v15, %v56_v14  ;;  %v48_v17 = vld [vmem:[#allocation2 + $0x20] sm:$0xff]  ;;  %v49_v18 = vld [vmem:[#allocation2 + $0x28] sm:$0xff]  ;;  %v58_v20 = vld [vmem:[#allocation2 + $0x70] sm:$0xff] }
   0xc   :  { %v62_v19 = vpack.c.bf16 %v49_v18, %v48_v17  ;;  %v59_v21 = vld [vmem:[#allocation2 + $0x78] sm:$0xff]  ;;  %v50_v23 = vld [vmem:[#allocation2 + $0x30] sm:$0xff]  ;;  %v691_v28 = vld [vmem:[%s989_s3 + $0x28] sm:$0xff] }
   0xd   :  { %v67_v22 = vpack.c.bf16 %v59_v21, %v58_v20  ;;  %v51_v24 = vld [vmem:[#allocation2 + $0x38] sm:$0xff]  ;;  %v692_v27 = vld [vmem:[%s989_s3 + $0x30] sm:$0xff]  ;;  %v52_v29 = vld [vmem:[#allocation2 + $0x40] sm:$0xff] }
   0xe   :  { %v63_v25 = vpack.c.bf16 %v51_v24, %v50_v23  ;;  %v693_v26 = vld [vmem:[%s989_s3 + $0x38] sm:$0xff]  ;;  %v53_v30 = vld [vmem:[#allocation2 + $0x48] sm:$0xff]  ;;  %v690_v31 = vld [vmem:[%s989_s3 + $0x20] sm:$0xff] }
   0xf   :  { %138 = vmatpush.bf16.msra.mxu0 %v683_v2  ;;  %700 = vmatpush.bf16.msra.mxu3 %v683_v2  ;;  %v64_v32 = vpack.c.bf16 %v53_v30, %v52_v29  ;;  %v54_v33 = vld [vmem:[#allocation2 + $0x50] sm:$0xff]  ;;  %v55_v34 = vld [vmem:[#allocation2 + $0x58] sm:$0xff]  ;;  %v687_v38 = vld [vmem:[%s989_s3 + $0x8] sm:$0xff] }
  0x10   :  { %277 = vmatpush.bf16.msra.mxu1 %v693_v26  ;;  %v65_v35 = vpack.c.bf16 %v55_v34, %v54_v33  ;;  %v689_v36 = vld [vmem:[%s989_s3 + $0x18] sm:$0xff]  ;;  %v688_v37 = vld [vmem:[%s989_s3 + $0x10] sm:$0xff]  ;;  %v686_v39 = vld [vmem:[%s989_s3] sm:$0xff] }
  0x11   :  { %v722_v41 = vld [vmem:[%s988_s2] ss:$0 sm:$0xff]  ;;  %v697_v33 = vld [vmem:[%s991_s5 + $0x18] sm:$0xff]  ;;  %v696_v34 = vld [vmem:[%s991_s5 + $0x10] sm:$0xff] }
  0x12   :  { %415 = vmatpush.bf16.msra.mxu2 %v697_v33 }
  0x13   :  { %139 = vmatpush.bf16.msra.mxu0 %v682_v3  ;;  %701 = vmatpush.bf16.msra.mxu3 %v682_v3 }
  0x14   :  { %278 = vmatpush.bf16.msra.mxu1 %v692_v27 }
  0x16   :  { %416 = vmatpush.bf16.msra.mxu2 %v696_v34 }
  0x17   :  { %140 = vmatpush.bf16.msra.mxu0 %v681_v4  ;;  %702 = vmatpush.bf16.msra.mxu3 %v681_v4 }
  0x18   :  { %279 = vmatpush.bf16.msra.mxu1 %v691_v28 }
  0x1b   :  { %141 = vmatpush.bf16.msra.mxu0 %v680_v5  ;;  %703 = vmatpush.bf16.msra.mxu3 %v680_v5 }
  0x1c   :  { %280 = vmatpush.bf16.msra.mxu1 %v690_v31 }
  0x1f   :  { %142 = vmatpush.bf16.msra.mxu0 %v679_v6  ;;  %704 = vmatpush.bf16.msra.mxu3 %v679_v6 }
  0x20   :  { %281 = vmatpush.bf16.msra.mxu1 %v689_v36 }
  0x23   :  { %143 = vmatpush.bf16.msra.mxu0 %v678_v7  ;;  %705 = vmatpush.bf16.msra.mxu3 %v678_v7 }
  0x24   :  { %282 = vmatpush.bf16.msra.mxu1 %v688_v37 }
  0x26   :  { %144 = vmatmul.bf16.vlgmr.msra.gmra.mxu0 %v60_v10  ;;  %174 = vmatmul.bf16.vlgmr.msra.gmra.mxu3 %v66_v16 }
  0x27   :  { %706 = vmatpush.bf16.msrb.mxu3 %v693_v26 }
  0x28   :  { %283 = vmatpush.bf16.msra.mxu1 %v687_v38 }
  0x2b   :  { %707 = vmatpush.bf16.msrb.mxu3 %v692_v27 }
  0x2c   :  { %284 = vmatpush.bf16.msra.mxu1 %v686_v39 }
  0x2f   :  { %708 = vmatpush.bf16.msrb.mxu3 %v691_v28 }
  0x33   :  { %709 = vmatpush.bf16.msrb.mxu3 %v690_v31 }
  0x36   :  { %149 = vmatmul.bf16.gmra.mxu0 %v61_v13  ;;  %179 = vmatmul.bf16.gmra.mxu3 %v67_v22 }
  0x37   :  { %710 = vmatpush.bf16.msrb.mxu3 %v689_v36  ;;  %v694_v36 = vld [vmem:[%s991_s5] sm:$0xff] }
  0x3b   :  { %711 = vmatpush.bf16.msrb.mxu3 %v688_v37 }
  0x3f   :  { %712 = vmatpush.bf16.msrb.mxu3 %v687_v38  ;;  %v723_v38 = vld [vmem:[%s990_s4] ss:$0 sm:$0xff] }
  0x43   :  { %713 = vmatpush.bf16.msrb.mxu3 %v686_v39 }
  0x46   :  { %154 = vmatmul.bf16.gmra.mxu0 %v62_v19 }
  0x47   :  { %714 = vmatpush.bf16.msra.mxu3 %v697_v33 }
  0x4b   :  { %715 = vmatpush.bf16.msra.mxu3 %v696_v34 }
  0x56   :  { %159 = vmatmul.bf16.gmra.mxu0 %v63_v25 }
  0x66   :  { %164 = vmatmul.bf16.gmra.mxu0 %v64_v32 }
  0x76   :  { %169 = vmatmul.bf16.gmra.mxu0 %v65_v35  ;;  %v695_v35 = vld [vmem:[%s991_s5 + $0x8] sm:$0xff] }
  0x77   :  { %417 = vmatpush.bf16.msra.mxu2 %v695_v35  ;;  %716 = vmatpush.bf16.msra.mxu3 %v695_v35 }
  0x7b   :  { %418 = vmatpush.bf16.msra.mxu2 %v694_v36  ;;  %717 = vmatpush.bf16.msra.mxu3 %v694_v36 }
  0xa3   :  { %v145_v40 = vpop.f32.mrf.mxu0 }
  0xa4   :  { %v146_v42 = vadd.f32 %v722_v41, %v145_v40 }
  0xa6   :  { %v185_v45 = vmax.f32 %v146_v42, 0.0 }
  0xa9   :  { %v175_v56 = vpop.f32.mrf.mxu3 }
  0xaa   :  { %v176_v58 = vadd.f32 %v722_v41, %v175_v56 }
  0xab   :  { %v147_v43 = vpop.f32.mrf.mxu0 }
  0xac   :  { %v148_v44 = vadd.f32 %v722_v41, %v147_v43  ;;  %v197_v0 = vmax.f32 %v176_v58, 0.0 }
  0xae   :  { %v186_v46 = vmax.f32 %v148_v44, 0.0 }
  0xb0   :  { %v201_v47 = vpack.c.bf16 %v186_v46, %v185_v45 }
  0xb1   :  { %v177_v61 = vpop.f32.mrf.mxu3 }
  0xb2   :  { %285 = vmatmul.bf16.vlgmr.msra.gmra.mxu1 %v201_v47  ;;  %v178_v1 = vadd.f32 %v722_v41, %v177_v61 }
  0xb3   :  { %v150_v48 = vpop.f32.mrf.mxu0 }
  0xb4   :  { %v151_v49 = vadd.f32 %v722_v41, %v150_v48  ;;  %v198_v3 = vmax.f32 %v178_v1, 0.0 }
  0xb6   :  { %v187_v52 = vmax.f32 %v151_v49, 0.0  ;;  %v207_v4 = vpack.c.bf16 %v198_v3, %v197_v0 }
  0xb8   :  { %315 = vmatmul.bf16.vlgmr.msrb.gmra.mxu3 %v207_v4 }
  0xb9   :  { %v180_v6 = vpop.f32.mrf.mxu3 }
  0xba   :  { %v181_v8 = vadd.f32 %v722_v41, %v180_v6 }
  0xbb   :  { %v152_v50 = vpop.f32.mrf.mxu0 }
  0xbc   :  { %v153_v51 = vadd.f32 %v722_v41, %v152_v50  ;;  %v199_v14 = vmax.f32 %v181_v8, 0.0 }
  0xbe   :  { %v188_v53 = vmax.f32 %v153_v51, 0.0 }
  0xc0   :  { %v202_v54 = vpack.c.bf16 %v188_v53, %v187_v52 }
  0xc1   :  { %v182_v11 = vpop.f32.mrf.mxu3 }
  0xc2   :  { %290 = vmatmul.bf16.gmra.mxu1 %v202_v54  ;;  %v183_v15 = vadd.f32 %v722_v41, %v182_v11 }
  0xc3   :  { %v155_v55 = vpop.f32.mrf.mxu0 }
  0xc4   :  { %v156_v57 = vadd.f32 %v722_v41, %v155_v55  ;;  %v200_v17 = vmax.f32 %v183_v15, 0.0 }
  0xc6   :  { %v189_v62 = vmax.f32 %v156_v57, 0.0  ;;  %v208_v18 = vpack.c.bf16 %v200_v17, %v199_v14 }
  0xc8   :  { %320 = vmatmul.bf16.gmra.mxu3 %v208_v18 }
  0xcb   :  { %v157_v59 = vpop.f32.mrf.mxu0 }
  0xcc   :  { %v158_v60 = vadd.f32 %v722_v41, %v157_v59 }
  0xce   :  { %v190_v63 = vmax.f32 %v158_v60, 0.0 }
  0xd0   :  { %v203_v2 = vpack.c.bf16 %v190_v63, %v189_v62 }
  0xd2   :  { %295 = vmatmul.bf16.gmra.mxu1 %v203_v2 }
  0xd3   :  { %v160_v5 = vpop.f32.mrf.mxu0 }
  0xd4   :  { %v161_v7 = vadd.f32 %v722_v41, %v160_v5 }
  0xd6   :  { %v191_v12 = vmax.f32 %v161_v7, 0.0 }
  0xdb   :  { %v162_v9 = vpop.f32.mrf.mxu0 }
  0xdc   :  { %v163_v10 = vadd.f32 %v722_v41, %v162_v9 }
  0xde   :  { %v192_v13 = vmax.f32 %v163_v10, 0.0 }
  0xe0   :  { %v204_v16 = vpack.c.bf16 %v192_v13, %v191_v12 }
  0xe2   :  { %300 = vmatmul.bf16.gmra.mxu1 %v204_v16 }
  0xe3   :  { %v165_v19 = vpop.f32.mrf.mxu0 }
  0xe4   :  { %v166_v20 = vadd.f32 %v722_v41, %v165_v19 }
  0xe6   :  { %v193_v23 = vmax.f32 %v166_v20, 0.0 }
  0xeb   :  { %v167_v21 = vpop.f32.mrf.mxu0 }
  0xec   :  { %v168_v22 = vadd.f32 %v722_v41, %v167_v21 }
  0xee   :  { %v194_v24 = vmax.f32 %v168_v22, 0.0 }
  0xf0   :  { %v205_v25 = vpack.c.bf16 %v194_v24, %v193_v23 }
  0xf2   :  { %305 = vmatmul.bf16.gmra.mxu1 %v205_v25 }
  0xf3   :  { %v170_v26 = vpop.f32.mrf.mxu0 }
  0xf4   :  { %v171_v27 = vadd.f32 %v722_v41, %v170_v26 }
  0xf6   :  { %v195_v30 = vmax.f32 %v171_v27, 0.0 }
  0xfb   :  { %v172_v28 = vpop.f32.mrf.mxu0 }
  0xfc   :  { %v173_v29 = vadd.f32 %v722_v41, %v172_v28 }
  0xfe   :  { %v196_v31 = vmax.f32 %v173_v29, 0.0 }
 0x100   :  { %v206_v32 = vpack.c.bf16 %v196_v31, %v195_v30  ;;  %v965_v30 = vld [vmem:[%s992_s6] ss:$0 sm:$0xff]  ;;  %s844_s6 = smov [#allocation5]  }
 0x101   :  { %s578_s23 = sshll.u32 %s844_s6, 4  ;;  %s579_s23 = int_to_ptr.vmem [resolvable:$true] %s578_s23 }
 0x102   :  { %310 = vmatmul.bf16.gmra.mxu1 %v206_v32 }
 0x12f   :  { %v286_v37 = vpop.f32.mrf.mxu1 }
 0x130   :  { %v287_v39 = vadd.f32 %v723_v38, %v286_v37 }
 0x132   :  { %v326_v42 = vmax.f32 %v287_v39, 0.0 }
 0x137   :  { %v288_v40 = vpop.f32.mrf.mxu1 }
 0x138   :  { %v289_v41 = vadd.f32 %v723_v38, %v288_v40 }
 0x13a   :  { %v327_v43 = vmax.f32 %v289_v41, 0.0 }
 0x13b   :  { %v316_v55 = vpop.f32.mrf.mxu3 }
 0x13c   :  { %v342_v44 = vpack.c.bf16 %v327_v43, %v326_v42  ;;  %v317_v25 = vadd.f32 %v723_v38, %v316_v55 }
 0x13e   :  { %670 = vmatmul.msk.bf16.vlgmr.msra.gmra.mxu2 %vm386_vm0, %v342_v44  ;;  %v338_v27 = vmax.f32 %v317_v25, 0.0 }
 0x13f   :  { %v291_v45 = vpop.f32.mrf.mxu1 }
 0x140   :  { %v292_v46 = vadd.f32 %v723_v38, %v291_v45 }
 0x142   :  { %v328_v49 = vmax.f32 %v292_v46, 0.0 }
 0x143   :  { %v318_v61 = vpop.f32.mrf.mxu3 }
 0x144   :  { %v319_v26 = vadd.f32 %v723_v38, %v318_v61 }
 0x146   :  { %v339_v28 = vmax.f32 %v319_v26, 0.0 }
 0x147   :  { %v293_v47 = vpop.f32.mrf.mxu1 }
 0x148   :  { %v294_v48 = vadd.f32 %v723_v38, %v293_v47  ;;  %v348_v29 = vpack.c.bf16 %v339_v28, %v338_v27 }
 0x14a   :  { %v329_v50 = vmax.f32 %v294_v48, 0.0 }
 0x14b   :  { %v321_v0 = vpop.f32.mrf.mxu3 }
 0x14c   :  { %v343_v51 = vpack.c.bf16 %v329_v50, %v328_v49  ;;  %v322_v5 = vadd.f32 %v723_v38, %v321_v0 }
 0x14e   :  { %671 = vmatmul.msk.bf16.gmra.mxu2 %vm386_vm0, %v343_v51  ;;  %v340_v8 = vmax.f32 %v322_v5, 0.0 }
 0x14f   :  { %v296_v52 = vpop.f32.mrf.mxu1 }
 0x150   :  { %v297_v53 = vadd.f32 %v723_v38, %v296_v52 }
 0x152   :  { %v330_v57 = vmax.f32 %v297_v53, 0.0 }
 0x153   :  { %v323_v7 = vpop.f32.mrf.mxu3 }
 0x154   :  { %v324_v9 = vadd.f32 %v723_v38, %v323_v7 }
 0x156   :  { %v341_v10 = vmax.f32 %v324_v9, 0.0 }
 0x157   :  { %v298_v54 = vpop.f32.mrf.mxu1 }
 0x158   :  { %v299_v56 = vadd.f32 %v723_v38, %v298_v54  ;;  %v349_v11 = vpack.c.bf16 %v341_v10, %v340_v8 }
 0x15a   :  { %v331_v58 = vmax.f32 %v299_v56, 0.0  ;;  %677 = vmatmul.msk.bf16.vlgmr.msra.gmra.mxu3 %vm386_vm0, %v349_v11 }
 0x15c   :  { %v344_v59 = vpack.c.bf16 %v331_v58, %v330_v57 }
 0x15e   :  { %672 = vmatmul.msk.bf16.gmra.mxu2 %vm386_vm0, %v344_v59 }
 0x15f   :  { %v301_v60 = vpop.f32.mrf.mxu1 }
 0x160   :  { %v302_v62 = vadd.f32 %v723_v38, %v301_v60 }
 0x162   :  { %v332_v2 = vmax.f32 %v302_v62, 0.0 }
 0x167   :  { %v303_v63 = vpop.f32.mrf.mxu1 }
 0x168   :  { %v304_v1 = vadd.f32 %v723_v38, %v303_v63 }
 0x16a   :  { %v333_v3 = vmax.f32 %v304_v1, 0.0 }
 0x16c   :  { %v345_v4 = vpack.c.bf16 %v333_v3, %v332_v2 }
 0x16e   :  { %673 = vmatmul.msk.bf16.gmra.mxu2 %vm386_vm0, %v345_v4 }
 0x16f   :  { %v306_v6 = vpop.f32.mrf.mxu1 }
 0x170   :  { %v307_v12 = vadd.f32 %v723_v38, %v306_v6 }
 0x172   :  { %v334_v15 = vmax.f32 %v307_v12, 0.0 }
 0x177   :  { %v308_v13 = vpop.f32.mrf.mxu1 }
 0x178   :  { %v309_v14 = vadd.f32 %v723_v38, %v308_v13 }
 0x17a   :  { %v335_v16 = vmax.f32 %v309_v14, 0.0 }
 0x17c   :  { %v346_v17 = vpack.c.bf16 %v335_v16, %v334_v15 }
 0x17e   :  { %674 = vmatmul.msk.bf16.gmra.mxu2 %vm386_vm0, %v346_v17 }
 0x17f   :  { %v311_v18 = vpop.f32.mrf.mxu1 }
 0x180   :  { %v312_v19 = vadd.f32 %v723_v38, %v311_v18 }
 0x182   :  { %v336_v22 = vmax.f32 %v312_v19, 0.0 }
 0x187   :  { %v313_v20 = vpop.f32.mrf.mxu1 }
 0x188   :  { %v314_v21 = vadd.f32 %v723_v38, %v313_v20 }
 0x18a   :  { %v337_v23 = vmax.f32 %v314_v21, 0.0 }
 0x18c   :  { %v347_v24 = vpack.c.bf16 %v337_v23, %v336_v22 }
 0x18e   :  { %675 = vmatmul.msk.bf16.gmra.mxu2 %vm386_vm0, %v347_v24 }
 0x19e   :  { %676 = vmatmul.msk.bf16.gmra.mxu2 %vm386_vm0, %v348_v29 }
 0x1c1   :  { %v420_v31 = vpop.f32.mrf.mxu2 }
 0x1c2   :  { %v421_v32 = vadd.f32 %v965_v30, %v420_v31 }
 0x1c4   :  { %v460_v33 = vsub.f32 0.0, %v421_v32 }
 0x1c6   :  { %v476_v34 = vmul.f32 1.442695, %v460_v33 }
 0x1c8   :  { %725 = vpow2.f32 %v476_v34 }
 0x1c9   :  { %v422_v35 = vpop.f32.mrf.mxu2 }
 0x1ca   :  { %v423_v36 = vadd.f32 %v965_v30, %v422_v35 }
 0x1cc   :  { %v461_v37 = vsub.f32 0.0, %v423_v36 }
 0x1ce   :  { %v726_v38 = vpop.eup %725  ;;  %v478_v39 = vmul.f32 1.442695, %v461_v37 }
 0x1cf   :  { %v508_v40 = vadd.f32 1.0, %v726_v38 }
 0x1d0   :  { %727 = vpow2.f32 %v478_v39 }
 0x1d1   :  { %v425_v41 = vpop.f32.mrf.mxu2  ;;  %729 = vrcp.f32 %v508_v40 }
 0x1d2   :  { %v426_v42 = vadd.f32 %v965_v30, %v425_v41 }
 0x1d4   :  { %v462_v43 = vsub.f32 0.0, %v426_v42 }
 0x1d6   :  { %v728_v44 = vpop.eup %727  ;;  %v480_v45 = vmul.f32 1.442695, %v462_v43 }
 0x1d7   :  { %v730_v46 = vpop.eup %729  ;;  %v509_v47 = vadd.f32 1.0, %v728_v44 }
 0x1d8   :  { %731 = vpow2.f32 %v480_v45  ;;  %540 = vxpose.xlu0.b32.start [1/16] (narrow) %v730_v46, 8 }
 0x1d9   :  { %733 = vrcp.f32 %v509_v47  ;;  %v427_v48 = vpop.f32.mrf.mxu2 }
 0x1da   :  { %v428_v49 = vadd.f32 %v965_v30, %v427_v48 }
 0x1dc   :  { %v463_v50 = vsub.f32 0.0, %v428_v49 }
 0x1de   :  { %v732_v51 = vpop.eup %731  ;;  %v482_v52 = vmul.f32 1.442695, %v463_v50  ;;  %v455_v50 = vpop.f32.mrf.mxu3 }
 0x1df   :  { %v734_v53 = vpop.eup %733  ;;  %v510_v54 = vadd.f32 1.0, %v732_v51 }
 0x1e0   :  { %735 = vpow2.f32 %v482_v52  ;;  %541 = vxpose.xlu0.b32.cont [2/16] (narrow) %v734_v53, 8 }
 0x1e1   :  { %737 = vrcp.f32 %v510_v54  ;;  %v430_v55 = vpop.f32.mrf.mxu2 }
 0x1e2   :  { %v431_v56 = vadd.f32 %v965_v30, %v430_v55 }
 0x1e4   :  { %v464_v57 = vsub.f32 0.0, %v431_v56  ;;  %v456_v56 = vadd.f32 %v965_v30, %v455_v50 }
 0x1e6   :  { %v736_v58 = vpop.eup %735  ;;  %v484_v59 = vmul.f32 1.442695, %v464_v57 }
 0x1e7   :  { %v738_v60 = vpop.eup %737  ;;  %v511_v61 = vadd.f32 1.0, %v736_v58 }
 0x1e8   :  { %739 = vpow2.f32 %v484_v59  ;;  %542 = vxpose.xlu0.b32.cont [3/16] (narrow) %v738_v60, 8  ;;  %v474_v59 = vsub.f32 0.0, %v456_v56 }
 0x1e9   :  { %741 = vrcp.f32 %v511_v61  ;;  %v432_v62 = vpop.f32.mrf.mxu2  ;;  %v457_v61 = vpop.f32.mrf.mxu3 }
 0x1ea   :  { %v433_v63 = vadd.f32 %v965_v30, %v432_v62 }
 0x1ec   :  { %v465_v0 = vsub.f32 0.0, %v433_v63 }
 0x1ee   :  { %v740_v1 = vpop.eup %739  ;;  %v486_v2 = vmul.f32 1.442695, %v465_v0 }
 0x1ef   :  { %v742_v3 = vpop.eup %741  ;;  %v512_v4 = vadd.f32 1.0, %v740_v1 }
 0x1f0   :  { %743 = vpow2.f32 %v486_v2  ;;  %543 = vxpose.xlu0.b32.cont [4/16] (narrow) %v742_v3, 8  ;;  %v504_v2 = vmul.f32 1.442695, %v474_v59  ;;  %v458_v3 = vadd.f32 %v965_v30, %v457_v61 }
 0x1f1   :  { %745 = vrcp.f32 %v512_v4  ;;  %v435_v5 = vpop.f32.mrf.mxu2 }
 0x1f2   :  { %v436_v6 = vadd.f32 %v965_v30, %v435_v5  ;;  %v475_v4 = vsub.f32 0.0, %v458_v3 }
 0x1f4   :  { %v466_v7 = vsub.f32 0.0, %v436_v6 }
 0x1f6   :  { %v744_v8 = vpop.eup %743  ;;  %v488_v9 = vmul.f32 1.442695, %v466_v7 }
 0x1f7   :  { %v746_v10 = vpop.eup %745  ;;  %v513_v11 = vadd.f32 1.0, %v744_v8  ;;  %v506_v8 = vmul.f32 1.442695, %v475_v4 }
 0x1f8   :  { %747 = vpow2.f32 %v488_v9  ;;  %544 = vxpose.xlu0.b32.cont [5/16] (narrow) %v746_v10, 8 }
 0x1f9   :  { %749 = vrcp.f32 %v513_v11  ;;  %v437_v12 = vpop.f32.mrf.mxu2 }
 0x1fa   :  { %v438_v13 = vadd.f32 %v965_v30, %v437_v12 }
 0x1fc   :  { %v467_v14 = vsub.f32 0.0, %v438_v13 }
 0x1fe   :  { %v748_v15 = vpop.eup %747  ;;  %v490_v16 = vmul.f32 1.442695, %v467_v14 }
 0x1ff   :  { %v750_v17 = vpop.eup %749  ;;  %v514_v18 = vadd.f32 1.0, %v748_v15 }
 0x200   :  { %751 = vpow2.f32 %v490_v16  ;;  %545 = vxpose.xlu0.b32.cont [6/16] (narrow) %v750_v17, 8 }
 0x201   :  { %753 = vrcp.f32 %v514_v18  ;;  %v440_v19 = vpop.f32.mrf.mxu2 }
 0x202   :  { %v441_v20 = vadd.f32 %v965_v30, %v440_v19 }
 0x204   :  { %v468_v21 = vsub.f32 0.0, %v441_v20 }
 0x206   :  { %v752_v22 = vpop.eup %751  ;;  %v492_v23 = vmul.f32 1.442695, %v468_v21 }
 0x207   :  { %v754_v24 = vpop.eup %753  ;;  %v515_v25 = vadd.f32 1.0, %v752_v22 }
 0x208   :  { %755 = vpow2.f32 %v492_v23  ;;  %546 = vxpose.xlu0.b32.cont [7/16] (narrow) %v754_v24, 8 }
 0x209   :  { %757 = vrcp.f32 %v515_v25  ;;  %v442_v26 = vpop.f32.mrf.mxu2 }
 0x20a   :  { %v443_v27 = vadd.f32 %v965_v30, %v442_v26 }
 0x20c   :  { %v469_v28 = vsub.f32 0.0, %v443_v27 }
 0x20e   :  { %v756_v29 = vpop.eup %755  ;;  %v494_v31 = vmul.f32 1.442695, %v469_v28 }
 0x20f   :  { %v758_v32 = vpop.eup %757  ;;  %v516_v33 = vadd.f32 1.0, %v756_v29 }
 0x210   :  { %759 = vpow2.f32 %v494_v31  ;;  %547 = vxpose.xlu0.b32.cont [8/16] (narrow) %v758_v32, 8 }
 0x211   :  { %761 = vrcp.f32 %v516_v33  ;;  %v445_v34 = vpop.f32.mrf.mxu2 }
 0x212   :  { %v446_v35 = vadd.f32 %v965_v30, %v445_v34 }
 0x214   :  { %v470_v36 = vsub.f32 0.0, %v446_v35 }
 0x216   :  { %v760_v37 = vpop.eup %759  ;;  %v496_v38 = vmul.f32 1.442695, %v470_v36 }
 0x217   :  { %v762_v39 = vpop.eup %761  ;;  %v517_v40 = vadd.f32 1.0, %v760_v37 }
 0x218   :  { %763 = vpow2.f32 %v496_v38  ;;  %548 = vxpose.xlu0.b32.cont [9/16] (narrow) %v762_v39, 8 }
 0x219   :  { %765 = vrcp.f32 %v517_v40  ;;  %v447_v41 = vpop.f32.mrf.mxu2 }
 0x21a   :  { %v448_v42 = vadd.f32 %v965_v30, %v447_v41 }
 0x21c   :  { %v471_v43 = vsub.f32 0.0, %v448_v42 }
 0x21e   :  { %v764_v44 = vpop.eup %763  ;;  %v498_v45 = vmul.f32 1.442695, %v471_v43 }
 0x21f   :  { %v766_v46 = vpop.eup %765  ;;  %v518_v47 = vadd.f32 1.0, %v764_v44 }
 0x220   :  { %767 = vpow2.f32 %v498_v45  ;;  %549 = vxpose.xlu0.b32.cont [10/16] (narrow) %v766_v46, 8 }
 0x221   :  { %769 = vrcp.f32 %v518_v47  ;;  %v450_v48 = vpop.f32.mrf.mxu2 }
 0x222   :  { %v451_v49 = vadd.f32 %v965_v30, %v450_v48 }
 0x224   :  { %v472_v51 = vsub.f32 0.0, %v451_v49 }
 0x226   :  { %v768_v52 = vpop.eup %767  ;;  %v500_v53 = vmul.f32 1.442695, %v472_v51 }
 0x227   :  { %v770_v54 = vpop.eup %769  ;;  %v519_v55 = vadd.f32 1.0, %v768_v52 }
 0x228   :  { %771 = vpow2.f32 %v500_v53  ;;  %550 = vxpose.xlu0.b32.cont [11/16] (narrow) %v770_v54, 8 }
 0x229   :  { %773 = vrcp.f32 %v519_v55  ;;  %v452_v57 = vpop.f32.mrf.mxu2 }
 0x22a   :  { %v453_v58 = vadd.f32 %v965_v30, %v452_v57 }
 0x22c   :  { %v473_v60 = vsub.f32 0.0, %v453_v58 }
 0x22e   :  { %v772_v62 = vpop.eup %771  ;;  %v502_v63 = vmul.f32 1.442695, %v473_v60 }
 0x22f   :  { %v774_v0 = vpop.eup %773  ;;  %v520_v1 = vadd.f32 1.0, %v772_v62 }
 0x230   :  { %775 = vpow2.f32 %v502_v63  ;;  %551 = vxpose.xlu0.b32.cont [12/16] (narrow) %v774_v0, 8 }
 0x231   :  { %777 = vrcp.f32 %v520_v1 }
 0x232   :  { %779 = vpow2.f32 %v504_v2 }
 0x236   :  { %v776_v5 = vpop.eup %775 }
 0x237   :  { %v778_v6 = vpop.eup %777  ;;  %v521_v7 = vadd.f32 1.0, %v776_v5 }
 0x238   :  { %552 = vxpose.xlu0.b32.cont [13/16] (narrow) %v778_v6, 8  ;;  %v780_v9 = vpop.eup %779 }
 0x239   :  { %781 = vrcp.f32 %v521_v7  ;;  %v522_v10 = vadd.f32 1.0, %v780_v9 }
 0x23a   :  { %783 = vpow2.f32 %v506_v8 }
 0x23b   :  { %785 = vrcp.f32 %v522_v10 }
 0x23f   :  { %v782_v11 = vpop.eup %781 }
 0x240   :  { %553 = vxpose.xlu0.b32.cont [14/16] (narrow) %v782_v11, 8  ;;  %v784_v12 = vpop.eup %783 }
 0x241   :  { %v523_v13 = vadd.f32 1.0, %v784_v12  ;;  %v786_v30 = vpop.eup %785 }
 0x243   :  { %787 = vrcp.f32 %v523_v13 }
 0x248   :  { %554 = vxpose.xlu0.b32.cont [15/16] (narrow) %v786_v30, 8 }
 0x249   :  { %v788_v14 = vpop.eup %787 }
 0x250   :  { %555 = vxpose.xlu0.b32.end [16/16] (narrow) %v788_v14, 8 }
 0x27c   :  { %v556_v15 = vpop.trf.xlu0 }
 0x27d   :  { %572 = vst [vmem:[#allocation5] sm:$0xf] %v556_v15 }
 0x27e   :  { %583 = dma.vmem_to_hbm [thread:$0]  %s579_s23, 64, %s581_s26, [#allocation4]  }
 0x27f   :  { %839 = dma.done.wait [#allocation4], 64  }
 0x280   :  { %840 = vsyncadd [#allocation4], 4294967232 }
 0x281   :  { %588 = vsyncpa [#allocation3], 1 }
 0x282   :  { %589 = vsyncpa [#allocation4], 1 }

</bundles_post_ra>
